<compile_context>
chip_gen: v7x
topology: tpu7x:2x2x1
jax: 0.10.0
libtpu: 0.0.40
codegen_flags: <defaults>
</compile_context>

<pallas_src>
import functools

import jax
import jax.numpy as jnp
from jax.experimental import pallas as pl
from jax.experimental.pallas import tpu as pltpu

# ---------------- model / problem configuration (synthetic) ----------------
MODEL_PARAMS = {"n_neurons": 32}
PARAMS = {
    "num_antennas": 4,
    "pilot_length": 4,
    "num_users": 2,
    "num_reflectors": 8,
    "total_power_constraint": 10.0,
}

IN_DIM = 2 * PARAMS["num_antennas"] * PARAMS["pilot_length"]          # 32
HID = MODEL_PARAMS["n_neurons"]                                        # 32
BS_DIM = 2 * PARAMS["num_antennas"] * PARAMS["num_users"]              # 16
IRS_DIM = 2 * PARAMS["num_reflectors"]                                 # 16
OUT_DIM = BS_DIM + IRS_DIM                                             # 32
NUM_REFLECTORS = PARAMS["num_reflectors"]                              # 8
TOTAL_POWER = PARAMS["total_power_constraint"]
SQRT_POWER = TOTAL_POWER ** 0.5

MAX_BATCH_TILE = 1024  # rows per grid step for large batches (sweep 512-2048)


def _leaky_relu(x, slope=0.05):
    return jnp.where(x > 0, x, slope * x)


def beamformer_kernel(
    x_ref,
    w1_ref, b1_ref,
    w2_ref, b2_ref,
    wt_ref, bt_ref,       # fused tail: fc3 folded into [output_BS | output_IRS]
    out_ref,
):
    x = x_ref[...]

    # fc1 -> LeakyReLU(0.05)
    h1 = jnp.dot(x, w1_ref[...], preferred_element_type=jnp.float32) + b1_ref[...]
    h1 = _leaky_relu(h1)
    # fc2 -> LeakyReLU(0.05)
    h2 = jnp.dot(h1, w2_ref[...], preferred_element_type=jnp.float32) + b2_ref[...]
    h2 = _leaky_relu(h2)
    # fused fc3 + heads: (B, BS_DIM + IRS_DIM), already concatenated layout
    head = jnp.dot(h2, wt_ref[...], preferred_element_type=jnp.float32) + bt_ref[...]

    bs = head[:, :BS_DIM]
    re = head[:, BS_DIM:BS_DIM + NUM_REFLECTORS]
    im = head[:, BS_DIM + NUM_REFLECTORS:]

    # BS power normalization: Frobenius norm per row (rsqrt on the EUP).
    bs_scale = SQRT_POWER * jax.lax.rsqrt(
        jnp.sum(bs * bs, axis=1, keepdims=True))

    # IRS unit-modulus normalization: shared 1/|z| for real and imag halves.
    inv_mod = jax.lax.rsqrt(re * re + im * im)

    # Write directly into static slices of the single (B, 32) output block.
    out_ref[:, :BS_DIM] = bs * bs_scale
    out_ref[:, BS_DIM:BS_DIM + NUM_REFLECTORS] = re * inv_mod
    out_ref[:, BS_DIM + NUM_REFLECTORS:] = im * inv_mod


def init_params(key):
    """Deterministic (PRNGKey-based) init of all Linear layers.

    Weights are returned as (in_features, out_features); biases as (1, out)."""
    ks = jax.random.split(key, 10)

    def linear(kw, kb, fan_in, fan_out):
        bound = 1.0 / (fan_in ** 0.5)
        w = jax.random.uniform(kw, (fan_in, fan_out), jnp.float32, -bound, bound)
        b = jax.random.uniform(kb, (1, fan_out), jnp.float32, -bound, bound)
        return w, b

    w1, b1 = linear(ks[0], ks[1], IN_DIM, HID)
    w2, b2 = linear(ks[2], ks[3], HID, HID)
    w3, b3 = linear(ks[4], ks[5], HID, HID)
    wbs, bbs = linear(ks[6], ks[7], HID, BS_DIM)
    wirs, birs = linear(ks[8], ks[9], HID, IRS_DIM)
    return (w1, b1, w2, b2, w3, b3, wbs, bbs, wirs, birs)


@functools.partial(jax.jit, static_argnames=())
def beamformer_forward(x, params):
    (w1, b1, w2, b2, w3, b3, wbs, bbs, wirs, birs) = params

    # Fold fc3 (no activation) into the two heads -> one fused tail matmul.
    # Exact algebra: h3 @ Wh + bh == h2 @ (w3 @ Wh) + (b3 @ Wh + bh).
    w_heads = jnp.concatenate((wbs, wirs), axis=1)        # (HID, 32)
    b_heads = jnp.concatenate((bbs, birs), axis=1)        # (1, 32)
    w_tail = w3 @ w_heads                                  # (HID, 32)
    b_tail = b3 @ w_heads + b_heads                        # (1, 32)

    batch = x.shape[0]
    # Batch tile: whole batch if small, else a multiple-of-8 tile that gets
    # double-buffered by the BlockSpec pipeline.
    tb = batch if batch <= MAX_BATCH_TILE else MAX_BATCH_TILE
    grid = (pl.cdiv(batch, tb),)

    def full_block(arr):
        return pl.BlockSpec(arr.shape, lambda i: (0, 0))

    out = pl.pallas_call(
        beamformer_kernel,
        out_shape=jax.ShapeDtypeStruct((batch, OUT_DIM), jnp.float32),
        grid=grid,
        in_specs=[
            pl.BlockSpec((tb, IN_DIM), lambda i: (i, 0)),   # x: batch-tiled
            full_block(w1), full_block(b1),
            full_block(w2), full_block(b2),
            full_block(w_tail), full_block(b_tail),
        ],
        out_specs=pl.BlockSpec((tb, OUT_DIM), lambda i: (i, 0)),
        compiler_params=pltpu.CompilerParams(
            dimension_semantics=("parallel",)),
    )(x, w1, b1, w2, b2, w_tail, b_tail)

    # out_BS / out_IRS are just slices of the fused output slab.
    # TODO(synk): the PyTorch module also returns the per-layer 'values' dict
    # of intermediates; only the final outputs are produced here.
    return {
        "out_BS": out[:, :BS_DIM],
        "out_IRS": out[:, BS_DIM:],
        "out": out,
        "in": x,
    }


def reference_forward(x, params):
    """Pure-JAX reference matching the original (unfused) PyTorch forward."""
    (w1, b1, w2, b2, w3, b3, wbs, bbs, wirs, birs) = params
    h1 = _leaky_relu(x @ w1 + b1)
    h2 = _leaky_relu(h1 @ w2 + b2)
    h3 = h2 @ w3 + b3
    obs = h3 @ wbs + bbs
    oirs = h3 @ wirs + birs
    frob = jnp.sqrt(jnp.sum(obs ** 2, axis=1, keepdims=True))
    nbs = obs * ((TOTAL_POWER ** 0.5) / frob)
    re, im = oirs[:, :NUM_REFLECTORS], oirs[:, NUM_REFLECTORS:]
    factor = jnp.sqrt(re ** 2 + im ** 2)
    nirs = jnp.concatenate((re / factor, im / factor), axis=1)
    return nbs, nirs, jnp.concatenate((nbs, nirs), axis=1)


if __name__ == "__main__":
    key = jax.random.PRNGKey(0)
    k_x, k_p = jax.random.split(key)

    batch = 2
    x = jax.random.normal(k_x, (batch, IN_DIM), dtype=jnp.float32)
    params = init_params(k_p)

    result = beamformer_forward(x, params)
    jax.block_until_ready(result)

    # sanity check against a pure-JAX reference (unfused, PyTorch-equivalent).
    ref_bs, ref_irs, ref_out = reference_forward(x, params)
    assert jnp.allclose(result["out_BS"], ref_bs, atol=1e-4, rtol=1e-4)
    assert jnp.allclose(result["out_IRS"], ref_irs, atol=1e-4, rtol=1e-4)
    assert jnp.allclose(result["out"], ref_out, atol=1e-4, rtol=1e-4)

    print("KERNEL_OK")
</pallas_src>

<mosaic_0001>
module attributes {stable_mosaic.version = 11 : i64} {
  func.func @beamformer_kernel(%arg0: i32, %arg1: memref<2x32xf32, #tpu.memory_space<vmem>>, %arg2: memref<32x32xf32, #tpu.memory_space<vmem>>, %arg3: memref<1x32xf32, #tpu.memory_space<vmem>>, %arg4: memref<32x32xf32, #tpu.memory_space<vmem>>, %arg5: memref<1x32xf32, #tpu.memory_space<vmem>>, %arg6: memref<32x32xf32, #tpu.memory_space<vmem>>, %arg7: memref<1x32xf32, #tpu.memory_space<vmem>>, %arg8: memref<2x32xf32, #tpu.memory_space<vmem>>) attributes {dimension_semantics = [#tpu.dimension_semantics<parallel>], iteration_bounds = array<i64: 1>, scalar_prefetch = 0 : i64, scratch_operands = 0 : i64, tpu.core_type = #tpu.core_type<tc>, window_params = [{transform_indices = @transform_0, window_bounds = array<i64: 2, 32>}, {pipeline_mode = #tpu.pipeline_mode<synchronous>, transform_indices = @transform_1, window_bounds = array<i64: 32, 32>}, {pipeline_mode = #tpu.pipeline_mode<synchronous>, transform_indices = @transform_2, window_bounds = array<i64: 1, 32>}, {pipeline_mode = #tpu.pipeline_mode<synchronous>, transform_indices = @transform_3, window_bounds = array<i64: 32, 32>}, {pipeline_mode = #tpu.pipeline_mode<synchronous>, transform_indices = @transform_4, window_bounds = array<i64: 1, 32>}, {pipeline_mode = #tpu.pipeline_mode<synchronous>, transform_indices = @transform_5, window_bounds = array<i64: 32, 32>}, {pipeline_mode = #tpu.pipeline_mode<synchronous>, transform_indices = @transform_6, window_bounds = array<i64: 1, 32>}, {transform_indices = @transform_7, window_bounds = array<i64: 2, 32>}]} {
    %c0 = arith.constant 0 : index
    %c0_0 = arith.constant 0 : index
    %0 = vector.load %arg1[%c0, %c0_0] : memref<2x32xf32, #tpu.memory_space<vmem>>, vector<2x32xf32>
    %c0_1 = arith.constant 0 : index
    %c0_2 = arith.constant 0 : index
    %1 = vector.load %arg2[%c0_1, %c0_2] : memref<32x32xf32, #tpu.memory_space<vmem>>, vector<32x32xf32>
    %cst = arith.constant dense<0.000000e+00> : vector<2x32xf32>
    %2 = tpu.matmul %0, %1, %cst {dimension_numbers = #tpu.dot_dimension_numbers<[1], [0], [0], [1], [0, 0, 1, 1], [], []>} : vector<2x32xf32>, vector<32x32xf32>, vector<2x32xf32> -> vector<2x32xf32>
    %c0_3 = arith.constant 0 : index
    %c0_4 = arith.constant 0 : index
    %3 = vector.load %arg3[%c0_3, %c0_4] : memref<1x32xf32, #tpu.memory_space<vmem>>, vector<1x32xf32>
    %4 = vector.broadcast %3 : vector<1x32xf32> to vector<2x32xf32>
    %5 = arith.addf %2, %4 : vector<2x32xf32>
    %cst_5 = arith.constant 0.000000e+00 : f32
    %6 = vector.broadcast %cst_5 : f32 to vector<2x32xf32>
    %7 = arith.cmpf ogt, %5, %6 : vector<2x32xf32>
    %cst_6 = arith.constant 5.000000e-02 : f32
    %8 = vector.broadcast %cst_6 : f32 to vector<2x32xf32>
    %9 = arith.mulf %8, %5 : vector<2x32xf32>
    %10 = arith.select %7, %5, %9 : vector<2x32xi1>, vector<2x32xf32>
    %c0_7 = arith.constant 0 : index
    %c0_8 = arith.constant 0 : index
    %11 = vector.load %arg4[%c0_7, %c0_8] : memref<32x32xf32, #tpu.memory_space<vmem>>, vector<32x32xf32>
    %cst_9 = arith.constant dense<0.000000e+00> : vector<2x32xf32>
    %12 = tpu.matmul %10, %11, %cst_9 {dimension_numbers = #tpu.dot_dimension_numbers<[1], [0], [0], [1], [0, 0, 1, 1], [], []>} : vector<2x32xf32>, vector<32x32xf32>, vector<2x32xf32> -> vector<2x32xf32>
    %c0_10 = arith.constant 0 : index
    %c0_11 = arith.constant 0 : index
    %13 = vector.load %arg5[%c0_10, %c0_11] : memref<1x32xf32, #tpu.memory_space<vmem>>, vector<1x32xf32>
    %14 = vector.broadcast %13 : vector<1x32xf32> to vector<2x32xf32>
    %15 = arith.addf %12, %14 : vector<2x32xf32>
    %cst_12 = arith.constant 0.000000e+00 : f32
    %16 = vector.broadcast %cst_12 : f32 to vector<2x32xf32>
    %17 = arith.cmpf ogt, %15, %16 : vector<2x32xf32>
    %cst_13 = arith.constant 5.000000e-02 : f32
    %18 = vector.broadcast %cst_13 : f32 to vector<2x32xf32>
    %19 = arith.mulf %18, %15 : vector<2x32xf32>
    %20 = arith.select %17, %15, %19 : vector<2x32xi1>, vector<2x32xf32>
    %c0_14 = arith.constant 0 : index
    %c0_15 = arith.constant 0 : index
    %21 = vector.load %arg6[%c0_14, %c0_15] : memref<32x32xf32, #tpu.memory_space<vmem>>, vector<32x32xf32>
    %cst_16 = arith.constant dense<0.000000e+00> : vector<2x32xf32>
    %22 = tpu.matmul %20, %21, %cst_16 {dimension_numbers = #tpu.dot_dimension_numbers<[1], [0], [0], [1], [0, 0, 1, 1], [], []>} : vector<2x32xf32>, vector<32x32xf32>, vector<2x32xf32> -> vector<2x32xf32>
    %c0_17 = arith.constant 0 : index
    %c0_18 = arith.constant 0 : index
    %23 = vector.load %arg7[%c0_17, %c0_18] : memref<1x32xf32, #tpu.memory_space<vmem>>, vector<1x32xf32>
    %24 = vector.broadcast %23 : vector<1x32xf32> to vector<2x32xf32>
    %25 = arith.addf %22, %24 : vector<2x32xf32>
    %26 = vector.extract_strided_slice %25 {offsets = [0, 0], sizes = [2, 16], strides = [1, 1]} : vector<2x32xf32> to vector<2x16xf32>
    %27 = vector.extract_strided_slice %25 {offsets = [0, 16], sizes = [2, 8], strides = [1, 1]} : vector<2x32xf32> to vector<2x8xf32>
    %28 = vector.extract_strided_slice %25 {offsets = [0, 24], sizes = [2, 8], strides = [1, 1]} : vector<2x32xf32> to vector<2x8xf32>
    %29 = arith.mulf %26, %26 : vector<2x16xf32>
    %cst_19 = arith.constant dense<0.000000e+00> : vector<2xf32>
    %30 = vector.multi_reduction <add>, %29, %cst_19 [1] : vector<2x16xf32> to vector<2xf32>
    %31 = vector.shape_cast %30 : vector<2xf32> to vector<2x1xf32>
    %32 = math.rsqrt %31 : vector<2x1xf32>
    %cst_20 = arith.constant 3.1622777 : f32
    %33 = vector.broadcast %cst_20 : f32 to vector<2x1xf32>
    %34 = arith.mulf %33, %32 : vector<2x1xf32>
    %35 = arith.mulf %27, %27 : vector<2x8xf32>
    %36 = arith.mulf %28, %28 : vector<2x8xf32>
    %37 = arith.addf %35, %36 : vector<2x8xf32>
    %38 = math.rsqrt %37 : vector<2x8xf32>
    %39 = vector.broadcast %34 : vector<2x1xf32> to vector<2x16xf32>
    %40 = arith.mulf %26, %39 : vector<2x16xf32>
    %c0_21 = arith.constant 0 : index
    %c0_22 = arith.constant 0 : index
    %41 = vector.load %arg8[%c0_21, %c0_22] : memref<2x32xf32, #tpu.memory_space<vmem>>, vector<2x16xf32>
    tpu.vector_store %arg8[%c0_21, %c0_22], %40 {strides = array<i32>} : memref<2x32xf32, #tpu.memory_space<vmem>>, vector<2x16xf32>,
    %42 = arith.mulf %27, %38 : vector<2x8xf32>
    %c0_23 = arith.constant 0 : index
    %c16 = arith.constant 16 : index
    %43 = vector.load %arg8[%c0_23, %c16] : memref<2x32xf32, #tpu.memory_space<vmem>>, vector<2x8xf32>
    tpu.vector_store %arg8[%c0_23, %c16], %42 {strides = array<i32>} : memref<2x32xf32, #tpu.memory_space<vmem>>, vector<2x8xf32>,
    %44 = arith.mulf %28, %38 : vector<2x8xf32>
    %c0_24 = arith.constant 0 : index
    %c24 = arith.constant 24 : index
    %45 = vector.load %arg8[%c0_24, %c24] : memref<2x32xf32, #tpu.memory_space<vmem>>, vector<2x8xf32>
    tpu.vector_store %arg8[%c0_24, %c24], %44 {strides = array<i32>} : memref<2x32xf32, #tpu.memory_space<vmem>>, vector<2x8xf32>,
    return
  }
  func.func @transform_0(%arg0: i32) -> (i32, i32) {
    %c0_i32 = arith.constant 0 : i32
    %c0_i32_0 = arith.constant 0 : i32
    return %arg0, %c0_i32 : i32, i32
  }
  func.func @transform_1(%arg0: i32) -> (i32, i32) {
    %c0_i32 = arith.constant 0 : i32
    %c0_i32_0 = arith.constant 0 : i32
    %c0_i32_1 = arith.constant 0 : i32
    return %c0_i32, %c0_i32_0 : i32, i32
  }
  func.func @transform_2(%arg0: i32) -> (i32, i32) {
    %c0_i32 = arith.constant 0 : i32
    %c0_i32_0 = arith.constant 0 : i32
    %c0_i32_1 = arith.constant 0 : i32
    return %c0_i32, %c0_i32_0 : i32, i32
  }
  func.func @transform_3(%arg0: i32) -> (i32, i32) {
    %c0_i32 = arith.constant 0 : i32
    %c0_i32_0 = arith.constant 0 : i32
    %c0_i32_1 = arith.constant 0 : i32
    return %c0_i32, %c0_i32_0 : i32, i32
  }
  func.func @transform_4(%arg0: i32) -> (i32, i32) {
    %c0_i32 = arith.constant 0 : i32
    %c0_i32_0 = arith.constant 0 : i32
    %c0_i32_1 = arith.constant 0 : i32
    return %c0_i32, %c0_i32_0 : i32, i32
  }
  func.func @transform_5(%arg0: i32) -> (i32, i32) {
    %c0_i32 = arith.constant 0 : i32
    %c0_i32_0 = arith.constant 0 : i32
    %c0_i32_1 = arith.constant 0 : i32
    return %c0_i32, %c0_i32_0 : i32, i32
  }
  func.func @transform_6(%arg0: i32) -> (i32, i32) {
    %c0_i32 = arith.constant 0 : i32
    %c0_i32_0 = arith.constant 0 : i32
    %c0_i32_1 = arith.constant 0 : i32
    return %c0_i32, %c0_i32_0 : i32, i32
  }
  func.func @transform_7(%arg0: i32) -> (i32, i32) {
    %c0_i32 = arith.constant 0 : i32
    %c0_i32_0 = arith.constant 0 : i32
    return %arg0, %c0_i32 : i32, i32
  }
}

</mosaic_0001>

<bundles_post_ra>
// kernel: beamformer_forward.1
= control target key start
LH: loop header
LB: loop body
LE: loop exit
PB: predicated region body
PF: predicated region fallthrough
CT: control target
= control target key end

     0   :  { %v396_v0 = vmov 0.0|0.0   ;;  %vm397_vm0 = vmmov 0   ;;  %v398_v4 = vmov 0.0   ;;  %vm38_vm1 = vcmask 261120   ;;  %s506_s1 = inlined_call_operand.vmem [shape: f32[32,32], index: 1, kind: input, shape index: {}]   ;;  %s507_s3 = inlined_call_operand.vmem [shape: f32[32,32], index: 3, kind: input, shape index: {}]   ;;  %s508_s0 = inlined_call_operand.vmem [shape: f32[2,32], index: 0, kind: input, shape index: {}]   ;;  %s509_s5 = inlined_call_operand.vmem [shape: f32[32,32], index: 5, kind: input, shape index: {}]   ;;  %s510_s2 = inlined_call_operand.vmem [shape: f32[1,32], index: 2, kind: input, shape index: {}]   ;;  %s511_s4 = inlined_call_operand.vmem [shape: f32[1,32], index: 4, kind: input, shape index: {}]   ;;  %s512_s6 = inlined_call_operand.vmem [shape: f32[1,32], index: 6, kind: input, shape index: {}]   ;;  %s513_s7 = inlined_call_operand.vmem [shape: f32[2,32], index: 7, kind: output, shape index: {}]  }
   0x1   :  { %369 = vmatprep.subr.bf16.mxu0 %v396_v0  ;;  %v27_v1 = vld [vmem:[%s506_s1] sm:$0xff]  ;;  %v28_v2 = vld [vmem:[%s506_s1 + $0x8] sm:$0xff]  ;;  %v29_v3 = vld [vmem:[%s506_s1 + $0x10] sm:$0xff]  ;;  %344 = vmatprep.mubr.msk.f32.mxu0 %vm397_vm0, %v398_v4  ;;  %vm287_vm4 = vcmask 123904   ;;  %vm302_vm5 = vcmask 189568   ;;  %vm309_vm6 = vcmask 255168  }
   0x2   :  { %v370_v5 = vpack.c.bf16 %v28_v2, %v27_v1  ;;  %v30_v6 = vld [vmem:[%s506_s1 + $0x18] sm:$0xff]  ;;  %375 = vmatprep.subr.bf16.mxu1 %v396_v0  ;;  %v115_v7 = vld [vmem:[%s507_s3] sm:$0xff]  ;;  %355 = vmatprep.mubr.msk.f32.mxu1 %vm397_vm0, %v398_v4  ;;  %v116_v8 = vld [vmem:[%s507_s3 + $0x8] sm:$0xff] }
   0x3   :  { %v373_v9 = vpack.c.bf16 %v30_v6, %v29_v3  ;;  %v376_v10 = vpack.c.bf16 %v116_v8, %v115_v7  ;;  %v26_v11 = vld [vmem:[%s508_s0] sm:$0x3]  ;;  %v117_v12 = vld [vmem:[%s507_s3 + $0x10] sm:$0xff]  ;;  %v118_v13 = vld [vmem:[%s507_s3 + $0x18] sm:$0xff] }
   0x4   :  { %371 = vmatpush3.bf16.msra.mxu0 %v370_v5  ;;  %v379_v14 = vpack.c.bf16 %v118_v13, %v117_v12  ;;  %v202_v15 = vld [vmem:[%s509_s5] sm:$0xff]  ;;  %v203_v16 = vld [vmem:[%s509_s5 + $0x8] sm:$0xff]  ;;  %v204_v24 = vld [vmem:[%s509_s5 + $0x10] sm:$0xff] }
   0x5   :  { %372 = vmatprep.subr.bf16.mxu0 %v396_v0  ;;  %377 = vmatpush3.bf16.msra.mxu1 %v376_v10  ;;  %v382_v17 = vpack.c.bf16 %v203_v16, %v202_v15  ;;  %v315_v18 = vld [vmem:[%s510_s2] ss:$0 sm:$0xff]  ;;  %v205_v25 = vld [vmem:[%s509_s5 + $0x18] sm:$0xff]  ;;  %s399_s5 = smov 120  }
   0x6   :  { %378 = vmatprep.subr.bf16.mxu1 %v396_v0  ;;  %v385_v26 = vpack.c.bf16 %v205_v25, %v204_v24  ;;  %v317_v27 = vld [vmem:[%s511_s4] ss:$0 sm:$0xff]  ;;  %s400_s4 = smov 8  }
   0x7   :  { %v319_v33 = vld [vmem:[%s512_s6] ss:$0 sm:$0xff] }
   0x8   :  { %374 = vmatpush3.bf16.msra.mxu0 %v373_v9 }
   0x9   :  { %381 = vmatprep.subr.bf16.mxu0 %v396_v0  ;;  %380 = vmatpush3.bf16.msra.mxu1 %v379_v14 }
   0xb   :  { %345 = vmatmul.mubr.msk.f32.vlgmr.msra.gmra.mrb[0].mxu0 %vm38_vm1, %v26_v11 }
   0xc   :  { %366 = vmatprep.mubr.msk.f32.mxu0 %vm397_vm0, %v398_v4  ;;  %383 = vmatpush3.bf16.msra.mxu0 %v382_v17 }
   0xd   :  { %384 = vmatprep.subr.bf16.mxu0 %v396_v0 }
  0x10   :  { %386 = vmatpush3.bf16.msra.mxu0 %v385_v26 }
  0xde   :  { %v108_v19 = vpop.f32.mrb[0].mxu0 }
  0xdf   :  { %v109_v20 = vadd.f32 %v315_v18, %v108_v19  ;;  %v346_v21 = vpop.f32.mrb[1].mxu0 }
  0xe1   :  { %vm112_vm2 = vcmp.gt.f32.partialorder %v109_v20, 0.0  ;;  %v113_v22 = vmul.f32 0.05, %v109_v20 }
  0xe3   :  { %v114_v23 = vsel %vm112_vm2, %v109_v20, %v113_v22 }
  0xe4   :  { %356 = vmatmul.mubr.msk.f32.vlgmr.msra.gmra.mrb[0].mxu1 %vm38_vm1, %v114_v23 }
 0x1b7   :  { %v195_v28 = vpop.f32.mrb[0].mxu1 }
 0x1b8   :  { %v196_v29 = vadd.f32 %v317_v27, %v195_v28  ;;  %v357_v30 = vpop.f32.mrb[1].mxu1 }
 0x1ba   :  { %vm199_vm3 = vcmp.gt.f32.partialorder %v196_v29, 0.0  ;;  %v200_v31 = vmul.f32 0.05, %v196_v29 }
 0x1bc   :  { %v201_v32 = vsel %vm199_vm3, %v196_v29, %v200_v31 }
 0x1bd   :  { %367 = vmatmul.mubr.msk.f32.vlgmr.msra.gmra.mrb[2].mxu0 %vm38_vm1, %v201_v32 }
 0x290   :  { %v282_v34 = vpop.f32.mrb[2].mxu0 }
 0x291   :  { %v283_v35 = vadd.f32 %v319_v33, %v282_v34  ;;  %v368_v36 = vpop.f32.mrb[3].mxu0 }
 0x293   :  { %v286_v37 = vmul.f32 %v283_v35, %v283_v35 }
 0x295   :  { %294 = vrot.lane.b32.xlu0 %v286_v37, %s399_s5  ;;  %v288_v38 = vsel %vm287_vm4, %v286_v37, 0.0 }
 0x2b4   :  { %289 = vadd.xlane.f32.xlu0 %v288_v38 }
 0x307   :  { %v295_v39 = vpop.permute.xlu0 %294 }
 0x308   :  { %v297_v40 = vadd.f32 %v295_v39, %v286_v37 }
 0x30a   :  { %392 = vrsqrt.f32 %v297_v40 }
 0x314   :  { %v393_v41 = vpop.eup %392 }
 0x315   :  { %305 = vrot.lane.b32.xlu1 %v393_v41, %s400_s4  ;;  %v301_v46 = vmul.f32 %v393_v41, %v283_v35 }
 0x341   :  { %v290_v42 = vpop.xlane.xlu0 %289 }
 0x342   :  { %394 = vrsqrt.f32 %v290_v42 }
 0x34c   :  { %v395_v43 = vpop.eup %394 }
 0x34d   :  { %v292_v44 = vmul.f32 3.1622777, %v395_v43 }
 0x34f   :  { %v299_v45 = vmul.f32 %v292_v44, %v283_v35 }
 0x351   :  { %300 = vst.msk [vmem:[%s513_s7] sm:$0x3] %vm287_vm4, %v299_v45 }
 0x352   :  { %303 = vst.msk [vmem:[%s513_s7] sm:$0x3] %vm302_vm5, %v301_v46 }
 0x387   :  { %v306_v47 = vpop.permute.xlu1 %305 }
 0x388   :  { %v308_v48 = vmul.f32 %v306_v47, %v283_v35 }
 0x38a   :  { %310 = vst.msk [vmem:[%s513_s7] sm:$0x3] %vm309_vm6, %v308_v48 }

</bundles_post_ra>
